<compile_context>
chip_gen: v6e
topology: v6e:2x2x1
jax: 0.10.0
libtpu: 0.0.40
codegen_flags: <defaults>
</compile_context>

<pallas_src>
import functools
import math

import jax
import jax.numpy as jnp
from jax.experimental import pallas as pl
from jax.experimental.pallas import tpu as pltpu


# ----------------------------------- kernels -----------------------------------------

def _embed2_kernel(x_ref, xm_ref, wv_ref, wt_ref, b_ref, o_ref, *, compute_dtype):
    """out = x @ Wv + x_mark @ Wt + b  (two MXU dots, f32 accumulation, f32 bias)."""
    xv = x_ref[...]
    xm = xm_ref[...]
    if compute_dtype is not None:
        xv = xv.astype(compute_dtype)
        xm = xm.astype(compute_dtype)
    acc = jnp.dot(xv, wv_ref[...], preferred_element_type=jnp.float32)
    acc = acc + jnp.dot(xm, wt_ref[...], preferred_element_type=jnp.float32)
    o_ref[...] = (acc + b_ref[...]).astype(o_ref.dtype)


def _embed1_kernel(x_ref, wv_ref, b_ref, o_ref, *, compute_dtype):
    """out = x @ Wv + b (value embedding only)."""
    xv = x_ref[...]
    if compute_dtype is not None:
        xv = xv.astype(compute_dtype)
    acc = jnp.dot(xv, wv_ref[...], preferred_element_type=jnp.float32)
    o_ref[...] = (acc + b_ref[...]).astype(o_ref.dtype)


# -------------------------------- setup helpers --------------------------------------

def _vmem_cap_bytes():
    """VMEM budget cap: <=48 MiB is safe on every generation (v7x: 64 MiB physical)."""
    cap = 48 << 20
    try:
        phys = getattr(pltpu.get_tpu_info(), "vmem_capacity_bytes", None)
        if phys:
            cap = min(cap, int(phys) * 3 // 4)
    except Exception:
        pass
    return cap


def _lane_pack_factor(d_model, n_in_feats, w_itemsize):
    """Rows packed per output row so the packed output lane width is a multiple of 128."""
    if d_model % 128 == 0:
        return 1
    r = 128 // math.gcd(d_model, 128)          # == lcm(d_model, 128) // d_model
    # keep the block-diagonal packed weights small enough to stay resident in VMEM
    if r > 16 or r * r * n_in_feats * d_model * w_itemsize > (4 << 20):
        return 1
    return r


def _pack_weight(w, r):
    """(K, D) -> block-diagonal (r*K, r*D): one matmul emits r packed output rows."""
    return w if r == 1 else jnp.kron(jnp.eye(r, dtype=w.dtype), w)


def _pack_bias(b_f32, r):
    return jnp.tile(b_f32, (r,)).reshape(1, r * b_f32.shape[0])


# --------------------------------- public wrapper -------------------------------------

def make_data_embedding(params, *, use_time_feat=True, compute_dtype=None,
                        out_dtype=None, target_block_bytes=8 << 20):
    """Pre-fuses / lane-packs the DataEmbedding weights once; returns a jittable forward.

    params: wv (c_in, d_model), bv (d_model,), wt (d_inp, d_model), bt (d_model,)
            (weights stored transposed vs. PyTorch: (in_features, out_features))
    forward(x, x_mark): x (B, L, c_in), x_mark (B, L, d_inp) -> (B, L, d_model)
    """
    wv = jnp.asarray(params["wv"])
    bv = jnp.asarray(params["bv"])
    c_in, d_model = wv.shape
    if use_time_feat:
        wt = jnp.asarray(params["wt"])
        bt = jnp.asarray(params["bt"])
        d_inp = wt.shape[0]
        bias = bv.astype(jnp.float32) + bt.astype(jnp.float32)   # bias add stays f32
    else:
        wt = None
        d_inp = 0
        bias = bv.astype(jnp.float32)

    w_dtype = compute_dtype or wv.dtype
    wv = wv.astype(w_dtype)
    if use_time_feat:
        wt = wt.astype(w_dtype)

    vmem_cap = _vmem_cap_bytes()
    r = _lane_pack_factor(d_model, c_in + d_inp, jnp.dtype(w_dtype).itemsize)

    # Build fused/packed weights & bias ONCE (plus the r=1 fallback used when B*L % r != 0).
    prepped = {}
    for rr in sorted({1, r}):
        entry = {"wv": _pack_weight(wv, rr), "bias": _pack_bias(bias, rr)}
        if use_time_feat:
            entry["wt"] = _pack_weight(wt, rr)
        prepped[rr] = entry

    def forward(x, x_mark=None):
        B, L, _ = x.shape
        M = B * L
        rr = r if M % r == 0 else 1            # fallback: masked (<128-lane) stores
        p = prepped[rr]
        Mg = M // rr
        rD = rr * d_model
        odt = out_dtype or compute_dtype or x.dtype
        out_isz = jnp.dtype(odt).itemsize

        # Free row-major reshapes (no data movement): rr consecutive rows per packed row.
        x2 = x.reshape(Mg, rr * c_in)
        row_bytes = rD * out_isz + rr * c_in * x.dtype.itemsize
        if use_time_feat:
            xm2 = x_mark.reshape(Mg, rr * d_inp)
            row_bytes += rr * d_inp * x_mark.dtype.itemsize

        # Byte-budget row tile: ~target_block_bytes of output per grid step, clamped so
        # the double-buffered tile footprint stays under half the VMEM cap.
        tmg = target_block_bytes // (rD * out_isz)
        tmg = min(tmg, (vmem_cap // 2) // (2 * row_bytes))
        tmg = max(8, (tmg // 8) * 8)
        if Mg <= tmg:
            tmg = Mg                            # small problem -> single grid step
        grid = (pl.cdiv(Mg, tmg),)              # ragged final block handled by Pallas

        w_bytes = sum(int(a.size) * a.dtype.itemsize for a in p.values())
        vmem_need = 2 * tmg * row_bytes + 2 * w_bytes + (2 << 20)
        vmem_limit = int(min(vmem_cap, max(vmem_need + (4 << 20), 16 << 20)))

        if use_time_feat:
            kernel = functools.partial(_embed2_kernel, compute_dtype=compute_dtype)
            in_specs = [
                pl.BlockSpec((tmg, rr * c_in), lambda i: (i, 0)),    # x rows
                pl.BlockSpec((tmg, rr * d_inp), lambda i: (i, 0)),   # x_mark rows
                pl.BlockSpec((rr * c_in, rD), lambda i: (0, 0)),     # Wv (resident)
                pl.BlockSpec((rr * d_inp, rD), lambda i: (0, 0)),    # Wt (resident)
                pl.BlockSpec((1, rD), lambda i: (0, 0)),             # fused bias (f32)
            ]
            args = (x2, xm2, p["wv"], p["wt"], p["bias"])
        else:
            kernel = functools.partial(_embed1_kernel, compute_dtype=compute_dtype)
            in_specs = [
                pl.BlockSpec((tmg, rr * c_in), lambda i: (i, 0)),
                pl.BlockSpec((rr * c_in, rD), lambda i: (0, 0)),
                pl.BlockSpec((1, rD), lambda i: (0, 0)),
            ]
            args = (x2, p["wv"], p["bias"])

        out_g = pl.pallas_call(
            kernel,
            out_shape=jax.ShapeDtypeStruct((Mg, rD), odt),
            grid_spec=pltpu.PrefetchScalarGridSpec(
                num_scalar_prefetch=0,
                grid=grid,
                in_specs=in_specs,
                out_specs=pl.BlockSpec((tmg, rD), lambda i: (i, 0)),
            ),
            compiler_params=pltpu.CompilerParams(
                dimension_semantics=("parallel",),
                vmem_limit_bytes=vmem_limit,
            ),
        )(*args)

        # Packed (Mg, rr*d_model) is row-major identical to (B, L, d_model): free reshape.
        return out_g.reshape(B, L, d_model)

    return forward


def init_params(key, c_in, d_model, d_inp):
    """Deterministic init mimicking nn.Linear's U(-1/sqrt(fan_in), 1/sqrt(fan_in))."""
    k1, k2, k3, k4 = jax.random.split(key, 4)
    bound_v = 1.0 / jnp.sqrt(float(c_in))
    bound_t = 1.0 / jnp.sqrt(float(d_inp))
    return {
        # stored as (in_features, out_features) = PyTorch weight transposed
        "wv": jax.random.uniform(k1, (c_in, d_model), jnp.float32, -bound_v, bound_v),
        "bv": jax.random.uniform(k2, (d_model,), jnp.float32, -bound_v, bound_v),
        "wt": jax.random.uniform(k3, (d_inp, d_model), jnp.float32, -bound_t, bound_t),
        "bt": jax.random.uniform(k4, (d_model,), jnp.float32, -bound_t, bound_t),
    }


if __name__ == "__main__":
    # shapes consistent with the module: batch=2, seq=8, c_in=4, d_model=32, freq='H'->5
    FREQ_MAP = {"Y": 1, "M": 2, "D": 4, "H": 5, "T": 6, "S": 7}
    B, L, C_IN, D_MODEL = 2, 8, 4, 32
    D_INP = FREQ_MAP["H"]

    key = jax.random.PRNGKey(0)
    kx, km, kp = jax.random.split(key, 3)
    x = jax.random.normal(kx, (B, L, C_IN), jnp.float32)
    x_mark = jax.random.normal(km, (B, L, D_INP), jnp.float32)
    params = init_params(kp, C_IN, D_MODEL, D_INP)

    ref = (x @ params["wv"] + params["bv"]) + (x_mark @ params["wt"] + params["bt"])

    # --- f32, with temporal embedding (lane-packed path: r=4, rD=128) ---
    fwd = jax.jit(make_data_embedding(params, use_time_feat=True))
    out = jax.block_until_ready(fwd(x, x_mark))
    assert out.shape == (B, L, D_MODEL)
    assert jnp.allclose(out, ref, atol=1e-4, rtol=1e-4)

    # --- f32, value embedding only ---
    fwd_nt = jax.jit(make_data_embedding(params, use_time_feat=False))
    out_nt = jax.block_until_ready(fwd_nt(x, x_mark))
    ref_nt = x @ params["wv"] + params["bv"]
    assert jnp.allclose(out_nt, ref_nt, atol=1e-4, rtol=1e-4)

    # --- bf16 compute + bf16 output (half-width HBM streams), f32 accumulation in-kernel ---
    fwd_bf16 = jax.jit(make_data_embedding(params, use_time_feat=True,
                                           compute_dtype=jnp.bfloat16))
    out_bf16 = jax.block_until_ready(
        fwd_bf16(x.astype(jnp.bfloat16), x_mark.astype(jnp.bfloat16)))
    assert out_bf16.dtype == jnp.bfloat16
    assert jnp.allclose(out_bf16.astype(jnp.float32), ref, atol=5e-2, rtol=5e-2)

    # --- fallback path: B*L not divisible by the packing factor -> r=1 (masked stores) ---
    B2, L2 = 2, 9
    x_f = jax.random.normal(kx, (B2, L2, C_IN), jnp.float32)
    xm_f = jax.random.normal(km, (B2, L2, D_INP), jnp.float32)
    out_f = jax.block_until_ready(fwd(x_f, xm_f))
    ref_f = (x_f @ params["wv"] + params["bv"]) + (xm_f @ params["wt"] + params["bt"])
    assert jnp.allclose(out_f, ref_f, atol=1e-4, rtol=1e-4)

    # --- multi-step grid with a ragged final block (small tile budget to force 2 steps) ---
    B3, L3, C3, D3 = 5, 1000, 7, 64
    params3 = init_params(kp, C3, D3, D_INP)
    x3 = jax.random.normal(kx, (B3, L3, C3), jnp.float32)
    xm3 = jax.random.normal(km, (B3, L3, D_INP), jnp.float32)
    fwd3 = jax.jit(make_data_embedding(params3, use_time_feat=True,
                                       target_block_bytes=1 << 20))
    out3 = jax.block_until_ready(fwd3(x3, xm3))
    ref3 = (x3 @ params3["wv"] + params3["bv"]) + (xm3 @ params3["wt"] + params3["bt"])
    assert out3.shape == (B3, L3, D3)
    assert jnp.allclose(out3, ref3, atol=1e-3, rtol=1e-3)

    print("KERNEL_OK")
</pallas_src>

<mosaic_0001>
module attributes {stable_mosaic.version = 11 : i64} {
  func.func @_embed2_kernel(%arg0: i32, %arg1: memref<4x16xf32, #tpu.memory_space<vmem>>, %arg2: memref<4x20xf32, #tpu.memory_space<vmem>>, %arg3: memref<16x128xf32, #tpu.memory_space<vmem>>, %arg4: memref<20x128xf32, #tpu.memory_space<vmem>>, %arg5: memref<1x128xf32, #tpu.memory_space<vmem>>, %arg6: memref<4x128xf32, #tpu.memory_space<vmem>>) attributes {dimension_semantics = [#tpu.dimension_semantics<parallel>], iteration_bounds = array<i64: 1>, scalar_prefetch = 0 : i64, scratch_operands = 0 : i64, tpu.core_type = #tpu.core_type<tc>, window_params = [{transform_indices = @transform_0, window_bounds = array<i64: 4, 16>}, {transform_indices = @transform_1, window_bounds = array<i64: 4, 20>}, {pipeline_mode = #tpu.pipeline_mode<synchronous>, transform_indices = @transform_2, window_bounds = array<i64: 16, 128>}, {pipeline_mode = #tpu.pipeline_mode<synchronous>, transform_indices = @transform_3, window_bounds = array<i64: 20, 128>}, {pipeline_mode = #tpu.pipeline_mode<synchronous>, transform_indices = @transform_4, window_bounds = array<i64: 1, 128>}, {transform_indices = @transform_5, window_bounds = array<i64: 4, 128>}]} {
    %c0 = arith.constant 0 : index
    %c0_0 = arith.constant 0 : index
    %0 = vector.load %arg1[%c0, %c0_0] : memref<4x16xf32, #tpu.memory_space<vmem>>, vector<4x16xf32>
    %c0_1 = arith.constant 0 : index
    %c0_2 = arith.constant 0 : index
    %1 = vector.load %arg2[%c0_1, %c0_2] : memref<4x20xf32, #tpu.memory_space<vmem>>, vector<4x20xf32>
    %c0_3 = arith.constant 0 : index
    %c0_4 = arith.constant 0 : index
    %2 = vector.load %arg3[%c0_3, %c0_4] : memref<16x128xf32, #tpu.memory_space<vmem>>, vector<16x128xf32>
    %cst = arith.constant dense<0.000000e+00> : vector<4x128xf32>
    %3 = tpu.matmul %0, %2, %cst {dimension_numbers = #tpu.dot_dimension_numbers<[1], [0], [0], [1], [0, 0, 1, 1], [], []>} : vector<4x16xf32>, vector<16x128xf32>, vector<4x128xf32> -> vector<4x128xf32>
    %c0_5 = arith.constant 0 : index
    %c0_6 = arith.constant 0 : index
    %4 = vector.load %arg4[%c0_5, %c0_6] : memref<20x128xf32, #tpu.memory_space<vmem>>, vector<20x128xf32>
    %cst_7 = arith.constant dense<0.000000e+00> : vector<4x128xf32>
    %5 = tpu.matmul %1, %4, %cst_7 {dimension_numbers = #tpu.dot_dimension_numbers<[1], [0], [0], [1], [0, 0, 1, 1], [], []>} : vector<4x20xf32>, vector<20x128xf32>, vector<4x128xf32> -> vector<4x128xf32>
    %6 = arith.addf %3, %5 : vector<4x128xf32>
    %c0_8 = arith.constant 0 : index
    %c0_9 = arith.constant 0 : index
    %7 = vector.load %arg5[%c0_8, %c0_9] : memref<1x128xf32, #tpu.memory_space<vmem>>, vector<1x128xf32>
    %8 = vector.broadcast %7 : vector<1x128xf32> to vector<4x128xf32>
    %9 = arith.addf %6, %8 : vector<4x128xf32>
    %c0_10 = arith.constant 0 : index
    %c0_11 = arith.constant 0 : index
    %10 = vector.load %arg6[%c0_10, %c0_11] : memref<4x128xf32, #tpu.memory_space<vmem>>, vector<4x128xf32>
    tpu.vector_store %arg6[%c0_10, %c0_11], %9 {strides = array<i32>} : memref<4x128xf32, #tpu.memory_space<vmem>>, vector<4x128xf32>,
    return
  }
  func.func @transform_0(%arg0: i32) -> (i32, i32) {
    %c0_i32 = arith.constant 0 : i32
    %c0_i32_0 = arith.constant 0 : i32
    return %arg0, %c0_i32 : i32, i32
  }
  func.func @transform_1(%arg0: i32) -> (i32, i32) {
    %c0_i32 = arith.constant 0 : i32
    %c0_i32_0 = arith.constant 0 : i32
    return %arg0, %c0_i32 : i32, i32
  }
  func.func @transform_2(%arg0: i32) -> (i32, i32) {
    %c0_i32 = arith.constant 0 : i32
    %c0_i32_0 = arith.constant 0 : i32
    %c0_i32_1 = arith.constant 0 : i32
    return %c0_i32, %c0_i32_0 : i32, i32
  }
  func.func @transform_3(%arg0: i32) -> (i32, i32) {
    %c0_i32 = arith.constant 0 : i32
    %c0_i32_0 = arith.constant 0 : i32
    %c0_i32_1 = arith.constant 0 : i32
    return %c0_i32, %c0_i32_0 : i32, i32
  }
  func.func @transform_4(%arg0: i32) -> (i32, i32) {
    %c0_i32 = arith.constant 0 : i32
    %c0_i32_0 = arith.constant 0 : i32
    %c0_i32_1 = arith.constant 0 : i32
    return %c0_i32, %c0_i32_0 : i32, i32
  }
  func.func @transform_5(%arg0: i32) -> (i32, i32) {
    %c0_i32 = arith.constant 0 : i32
    %c0_i32_0 = arith.constant 0 : i32
    return %arg0, %c0_i32 : i32, i32
  }
}

</mosaic_0001>

<bundles_post_ra>
// kernel: forward.1
= control target key start
LH: loop header
LB: loop body
LE: loop exit
PB: predicated region body
PF: predicated region fallthrough
CT: control target
= control target key end

     0   :  { %vm31_vm0 = vcmask 1043456   ;;  %v221_v0 = vmov 0.0   ;;  %vm105_vm1 = vcmask 130048   ;;  %vm222_vm2 = vmmov 0   ;;  %s280_s3 = inlined_call_operand.vmem [shape: f32[20,128], index: 3, kind: input, shape index: {}]   ;;  %s281_s2 = inlined_call_operand.vmem [shape: f32[16,128], index: 2, kind: input, shape index: {}]   ;;  %s282_s0 = inlined_call_operand.vmem [shape: f32[4,16], index: 0, kind: input, shape index: {}]   ;;  %s283_s1 = inlined_call_operand.vmem [shape: f32[4,20], index: 1, kind: input, shape index: {}]   ;;  %s284_s4 = inlined_call_operand.vmem [shape: f32[1,128], index: 4, kind: input, shape index: {}]   ;;  %s285_s5 = inlined_call_operand.vmem [shape: f32[4,128], index: 5, kind: output, shape index: {}]  }
   0x1   :  { %203 = vmatprep.subr.mxu0 %v221_v0  ;;  %212 = vmatprep.subr.mxu1 %v221_v0  ;;  %v26_v1 = vld [vmem:[%s280_s3 + $0x10] sm:$0xf]  ;;  %v23_v2 = vld [vmem:[%s281_s2 + $0x8] sm:$0xff]  ;;  %v22_v4 = vld [vmem:[%s281_s2] sm:$0xff]  ;;  %vm27_vm3 = vcmask 162816  }
   0x2   :  { %v25_v3 = vld [vmem:[%s280_s3 + $0x8] sm:$0xff]  ;;  %204 = vmatpush3.msk.msra.mxu0 %vm31_vm0, %v26_v1  ;;  %213 = vmatpush3.msra.mxu1 %v23_v2  ;;  %v20_v5 = vld [vmem:[%s282_s0] sm:$0xf] }
   0x3   :  { %205 = vmatprep.subr.mxu0 %v221_v0  ;;  %214 = vmatprep.subr.mxu1 %v221_v0  ;;  %v24_v6 = vld [vmem:[%s280_s3] sm:$0xff] }
   0x4   :  { %206 = vmatpush3.msra.mxu0 %v25_v3  ;;  %215 = vmatpush3.msra.mxu1 %v22_v4  ;;  %v21_v7 = vld [vmem:[%s283_s1] sm:$0xf] }
   0x5   :  { %216 = vmatprep.mubr.msk.f32.mxu1 %vm222_vm2, %v221_v0  ;;  %207 = vmatprep.subr.mxu0 %v221_v0  ;;  %v195_v10 = vld [vmem:[%s284_s4] ss:$0 sm:$0xff] }
   0x6   :  { %217 = vmatmul.mubr.msk.f32.vlgmr.msra.gmra.mxu1 %vm105_vm1, %v20_v5  ;;  %208 = vmatpush3.msra.mxu0 %v24_v6 }
   0x7   :  { %209 = vmatprep.mubr.msk.f32.mxu0 %vm222_vm2, %v221_v0 }
   0x8   :  { %210 = vmatmul.mubr.msk.f32.vlgmr.msra.gmra.mxu0 %vm27_vm3, %v21_v7 }
  0xc6   :  { %v175_v8 = vpop.f32.mrf.mxu1 }
  0xc8   :  { %v101_v9 = vpop.f32.mrf.mxu0  ;;  %v218_v11 = vpop.f32.mrf.mxu1 }
  0xc9   :  { %v176_v12 = vadd.f32 %v175_v8, %v101_v9 }
  0xca   :  { %v211_v13 = vpop.f32.mrf.mxu0 }
  0xcb   :  { %v186_v14 = vadd.f32 %v195_v10, %v176_v12 }
  0xcd   :  { %187 = vst [vmem:[%s285_s5] sm:$0xf] %v186_v14 }

</bundles_post_ra>
